<compile_context>
chip_gen: v5e
topology: v5e:2x2
jax: 0.10.0
libtpu: 0.0.40
codegen_flags: <defaults>
</compile_context>

<pallas_src>
import math

import numpy as np

import jax
import jax.numpy as jnp
from jax.experimental import pallas as pl
from jax.experimental.pallas import tpu as pltpu


def _tied_linear_kernel(x_ref, w_ref, o_ref):
    # x_ref: (TM, K) native dtype   w_ref: (K, N) compute dtype   o_ref: (TM, N)
    x = x_ref[...].astype(w_ref.dtype)  # in-kernel cast (no extra HBM pass)
    o_ref[...] = jnp.dot(
        x, w_ref[...], preferred_element_type=jnp.float32
    ).astype(o_ref.dtype)


def _tied_linear_kernel_ktiled(x_ref, w_ref, o_ref, acc_ref):
    # Grid: (M tiles [parallel], K tiles [arbitrary, reduction last]).
    @pl.when(pl.program_id(1) == 0)
    def _():
        acc_ref[...] = jnp.zeros_like(acc_ref)

    x = x_ref[...].astype(w_ref.dtype)
    acc_ref[...] += jnp.dot(x, w_ref[...], preferred_element_type=jnp.float32)

    @pl.when(pl.program_id(1) == pl.num_programs(1) - 1)
    def _():
        o_ref[...] = acc_ref[...].astype(o_ref.dtype)


def _round_down(n: int, k: int) -> int:
    return (n // k) * k


def tied_linear(
    x: jax.Array,
    shared_weight: jax.Array,
    *,
    tm: int = 512,                 # v7x: 512-1024, v6e: 1024-2048, v5e: 256-512
    compute_dtype=jnp.bfloat16,    # set jnp.float32 for bit-parity-sensitive uses
    out_dtype=None,                # default x.dtype; bf16 cuts writeback traffic ~2x
    vmem_limit_bytes: int | None = None,
    max_untiled_k_bytes: int = 40 << 20,   # switch to K tiling above this working set
) -> jax.Array:
    """x: (..., d_model), shared_weight: (d_model, 512) -> (..., 512)."""
    d_model, d_out = shared_weight.shape
    assert x.shape[-1] == d_model

    out_dtype = x.dtype if out_dtype is None else out_dtype
    lead_shape = x.shape[:-1]
    m = int(math.prod(lead_shape)) if lead_shape else 1
    x2d = x.reshape(m, d_model)

    # Hoisted weight cast: callers in a hot loop should already carry the tied
    # weight in compute_dtype (then this is a no-op); otherwise cast the small
    # (d_model, 512) matrix once.
    if shared_weight.dtype != jnp.dtype(compute_dtype):
        w = shared_weight.astype(compute_dtype)
    else:
        w = shared_weight

    # M tile: multiple of 8 when tiling, or the full (possibly ragged) extent.
    tm = max(8, _round_down(tm, 8))
    tm_eff = min(tm, m)
    grid_m = pl.cdiv(m, tm_eff)

    x_b = np.dtype(x2d.dtype).itemsize
    w_b = np.dtype(compute_dtype).itemsize
    o_b = np.dtype(out_dtype).itemsize

    # Untiled-K working set (double-buffered x, weight, output).
    untiled_need = (
        2 * tm_eff * d_model * x_b
        + 2 * d_model * d_out * w_b
        + 2 * tm_eff * d_out * o_b
    )

    # Pick a K tile only if the untiled working set is too large and d_model
    # has a clean divisor (a ragged K block would pollute the reduction).
    tk = None
    if untiled_need > max_untiled_k_bytes:
        for cand in (4096, 2048, 1024, 512, 256):
            if cand < d_model and d_model % cand == 0:
                tk = cand
                break

    if tk is None:
        need = untiled_need
    else:
        need = (
            2 * tm_eff * tk * x_b
            + 2 * tk * d_out * w_b
            + 2 * tm_eff * d_out * o_b
            + tm_eff * d_out * 4            # f32 accumulator scratch
        )

    if vmem_limit_bytes is None:
        # 25% + 4 MiB headroom for compiler scratch; clamp to sane bounds.
        vmem_limit_bytes = min(max(int(need * 1.25) + (4 << 20), 32 << 20), 120 << 20)

    if tk is None:
        out2d = pl.pallas_call(
            _tied_linear_kernel,
            out_shape=jax.ShapeDtypeStruct((m, d_out), out_dtype),
            grid_spec=pltpu.PrefetchScalarGridSpec(
                num_scalar_prefetch=0,
                grid=(grid_m,),
                in_specs=[
                    # Stream TM rows of the activation per grid step.
                    pl.BlockSpec((tm_eff, d_model), lambda i: (i, 0)),
                    # Whole tied weight resident in VMEM (constant index_map).
                    pl.BlockSpec((d_model, d_out), lambda i: (0, 0)),
                ],
                out_specs=pl.BlockSpec((tm_eff, d_out), lambda i: (i, 0)),
            ),
            compiler_params=pltpu.CompilerParams(
                dimension_semantics=("parallel",),
                vmem_limit_bytes=vmem_limit_bytes,
            ),
        )(x2d, w)
    else:
        out2d = pl.pallas_call(
            _tied_linear_kernel_ktiled,
            out_shape=jax.ShapeDtypeStruct((m, d_out), out_dtype),
            grid_spec=pltpu.PrefetchScalarGridSpec(
                num_scalar_prefetch=0,
                grid=(grid_m, d_model // tk),
                in_specs=[
                    pl.BlockSpec((tm_eff, tk), lambda i, k: (i, k)),
                    pl.BlockSpec((tk, d_out), lambda i, k: (k, 0)),
                ],
                out_specs=pl.BlockSpec((tm_eff, d_out), lambda i, k: (i, 0)),
                scratch_shapes=[pltpu.VMEM((tm_eff, d_out), jnp.float32)],
            ),
            compiler_params=pltpu.CompilerParams(
                dimension_semantics=("parallel", "arbitrary"),
                vmem_limit_bytes=vmem_limit_bytes,
            ),
        )(x2d, w)

    return out2d.reshape(*lead_shape, d_out)


if __name__ == "__main__":
    key = jax.random.PRNGKey(0)
    k_x, k_w, k_x2, k_w2 = jax.random.split(key, 4)

    # Small shapes consistent with the module: (batch, seq, d_model) -> (..., 512).
    batch, seq, d_model, d_out = 2, 8, 32, 512
    shared_weight = jax.random.normal(k_w, (d_model, d_out), dtype=jnp.float32) * 0.02
    x = jax.random.normal(k_x, (batch, seq, d_model), dtype=jnp.float32)

    out = tied_linear(x, shared_weight)
    jax.block_until_ready(out)

    # Reference (same math as F.linear(x, W.t())); tolerance covers the
    # intentional bf16 activation cast (f32 MXU accumulation).
    ref = jnp.einsum("bsd,do->bso", x, shared_weight)
    assert out.shape == (batch, seq, d_out)
    err = float(jnp.max(jnp.abs(out - ref)))
    assert jnp.allclose(out, ref, atol=2e-2, rtol=2e-2), err

    # Exercise the K-tiled fallback (used when the untiled working set would
    # exceed VMEM, e.g. very large d_model on v7x) with a ragged M and a
    # weight already stored in the compute dtype (hoisted cast path).
    d_model2, m_rows = 1024, 200
    w2 = (jax.random.normal(k_w2, (d_model2, d_out), dtype=jnp.float32) * 0.02
          ).astype(jnp.bfloat16)
    x2 = jax.random.normal(k_x2, (m_rows, d_model2), dtype=jnp.float32)

    out2 = tied_linear(x2, w2, tm=128, max_untiled_k_bytes=0)
    jax.block_until_ready(out2)
    ref2 = x2 @ w2.astype(jnp.float32)
    assert out2.shape == (m_rows, d_out)
    err2 = float(jnp.max(jnp.abs(out2 - ref2)))
    assert jnp.allclose(out2, ref2, atol=5e-2, rtol=5e-2), err2

    print("KERNEL_OK")
</pallas_src>

<mosaic_0001>
module attributes {stable_mosaic.version = 11 : i64} {
  func.func @_tied_linear_kernel(%arg0: i32, %arg1: memref<16x32xf32, #tpu.memory_space<vmem>>, %arg2: memref<32x512xbf16, #tpu.memory_space<vmem>>, %arg3: memref<16x512xf32, #tpu.memory_space<vmem>>) attributes {dimension_semantics = [#tpu.dimension_semantics<parallel>], iteration_bounds = array<i64: 1>, scalar_prefetch = 0 : i64, scratch_operands = 0 : i64, tpu.core_type = #tpu.core_type<tc>, window_params = [{transform_indices = @transform_0, window_bounds = array<i64: 16, 32>}, {pipeline_mode = #tpu.pipeline_mode<synchronous>, transform_indices = @transform_1, window_bounds = array<i64: 32, 512>}, {transform_indices = @transform_2, window_bounds = array<i64: 16, 512>}]} {
    %c0 = arith.constant 0 : index
    %c0_0 = arith.constant 0 : index
    %0 = vector.load %arg1[%c0, %c0_0] : memref<16x32xf32, #tpu.memory_space<vmem>>, vector<16x32xf32>
    %1 = arith.truncf %0 : vector<16x32xf32> to vector<16x32xbf16>
    %c0_1 = arith.constant 0 : index
    %c0_2 = arith.constant 0 : index
    %2 = vector.load %arg2[%c0_1, %c0_2] : memref<32x512xbf16, #tpu.memory_space<vmem>>, vector<32x512xbf16>
    %cst = arith.constant dense<0.000000e+00> : vector<16x512xf32>
    %3 = tpu.matmul %1, %2, %cst {dimension_numbers = #tpu.dot_dimension_numbers<[1], [0], [0], [1], [0, 0, 1, 1], [], []>} : vector<16x32xbf16>, vector<32x512xbf16>, vector<16x512xf32> -> vector<16x512xf32>
    %c0_3 = arith.constant 0 : index
    %c0_4 = arith.constant 0 : index
    %4 = vector.load %arg3[%c0_3, %c0_4] : memref<16x512xf32, #tpu.memory_space<vmem>>, vector<16x512xf32>
    tpu.vector_store %arg3[%c0_3, %c0_4], %3 {strides = array<i32>} : memref<16x512xf32, #tpu.memory_space<vmem>>, vector<16x512xf32>,
    return
  }
  func.func @transform_0(%arg0: i32) -> (i32, i32) {
    %c0_i32 = arith.constant 0 : i32
    %c0_i32_0 = arith.constant 0 : i32
    return %arg0, %c0_i32 : i32, i32
  }
  func.func @transform_1(%arg0: i32) -> (i32, i32) {
    %c0_i32 = arith.constant 0 : i32
    %c0_i32_0 = arith.constant 0 : i32
    %c0_i32_1 = arith.constant 0 : i32
    return %c0_i32, %c0_i32_0 : i32, i32
  }
  func.func @transform_2(%arg0: i32) -> (i32, i32) {
    %c0_i32 = arith.constant 0 : i32
    %c0_i32_0 = arith.constant 0 : i32
    return %arg0, %c0_i32 : i32, i32
  }
}

</mosaic_0001>

<bundles_post_ra>
// kernel: tpu_custom_call.1
= control target key start
LH: loop header
LB: loop body
LE: loop exit
PB: predicated region body
PF: predicated region fallthrough
CT: control target
= control target key end

     0   :  { %7 = vsyncpa [#allocation3], 0  ;;  %s348_s0 = inlined_call_operand.hbm [shape: f32[16,32], index: 0, kind: input, shape index: {}]   ;;  %s349_s1 = inlined_call_operand.hbm [shape: bf16[32,512], index: 1, kind: input, shape index: {}]   ;;  %s350_s2 = inlined_call_operand.hbm [shape: f32[16,512], index: 2, kind: output, shape index: {}]  }
   0x1   :  { %8 = vsyncpa [#allocation6], 0 }
   0x2   :  { %9 = vsyncpa [#allocation4], 0  ;;  %s14_s11 = sshll.u32 %s348_s0, 4  ;;  %s315_s12 = smov [#allocation2]   ;;  %s15_s11 = int_to_ptr.hbm [resolvable:$true] %s14_s11 }
   0x3   :  { %s16_s13 = sshll.u32 %s315_s12, 4  ;;  %s27_s16 = sshll.u32 %s349_s1, 4  ;;  %s17_s13 = int_to_ptr.vmem [resolvable:$true] %s16_s13  ;;  %s28_s16 = int_to_ptr.hbm [resolvable:$true] %s27_s16 }
   0x4   :  { %s316_s17 = smov 128   ;;  %s317_s18 = smov 8  }
   0x5   :  { %22 = dma.hbm_to_vmem [thread:$0]  %s15_s11, 256, %s17_s13, [#allocation3], %s316_s17, %s316_s17, %s317_s18  }
   0x6   :  { %s318_s19 = smov [#allocation5]   ;;  %s319_s21 = smov 256  }
   0x7   :  { %s29_s20 = sshll.u32 %s318_s19, 4  ;;  %s320_s22 = smov 16   ;;  %s30_s20 = int_to_ptr.vmem [resolvable:$true] %s29_s20 }
   0x8   :  { %35 = dma.hbm_to_vmem [thread:$0]  %s28_s16, 1024, %s30_s20, [#allocation6], %s319_s21, %s319_s21, %s320_s22  }
   0x9   :  { %309 = dma.done.wait [#allocation3], 256  }
   0xa   :  { %310 = vsyncadd [#allocation3], 4294967040 }
   0xb   :  { %311 = dma.done.wait [#allocation6], 1024  }
   0xc   :  { %312 = vsyncadd [#allocation6], 4294966272  ;;  %v202_v0 = vld [vmem:[#allocation5 + $0x20] sm:$0xf]  ;;  %v226_v1 = vld [vmem:[#allocation5 + $0x2c] sm:$0xf0] }
   0xd   :  { %v224_v2 = vld [vmem:[#allocation5 + $0x24] sm:$0xf]  ;;  %v203_v3 = vor.u32 %v226_v1, %v202_v0  ;;  %v204_v4 = vld [vmem:[#allocation5 + $0x30] sm:$0xf0]  ;;  %v210_v5 = vld [vmem:[#allocation5 + $0x28] sm:$0xf] }
   0xe   :  { %v227_v6 = vld [vmem:[#allocation5 + $0x34] sm:$0xf0]  ;;  %v207_v7 = vor.u32 %v224_v2, %v204_v4  ;;  %v225_v9 = vld [vmem:[#allocation5 + $0x2c] sm:$0xf]  ;;  %v212_v10 = vld [vmem:[#allocation5 + $0x38] sm:$0xf0] }
   0xf   :  { %v211_v8 = vor.u32 %v227_v6, %v210_v5  ;;  %v186_v11 = vld [vmem:[#allocation5] sm:$0xf]  ;;  %106 = vmatpush.bf16.msra.mxu0 %v203_v3  ;;  %v215_v12 = vor.u32 %v225_v9, %v212_v10  ;;  %v222_v13 = vld [vmem:[#allocation5 + $0xc] sm:$0xf0]  ;;  %v220_v14 = vld [vmem:[#allocation5 + $0x4] sm:$0xf] }
  0x10   :  { %v188_v15 = vld [vmem:[#allocation5 + $0x10] sm:$0xf0]  ;;  %120 = vmatpush.bf16.msra.mxu1 %v207_v7  ;;  %v187_v16 = vor.u32 %v222_v13, %v186_v11  ;;  %v194_v18 = vld [vmem:[#allocation5 + $0x8] sm:$0xf]  ;;  %v223_v19 = vld [vmem:[#allocation5 + $0x14] sm:$0xf0] }
  0x11   :  { %134 = vmatpush.bf16.msra.mxu2 %v211_v8  ;;  %v191_v17 = vor.u32 %v220_v14, %v188_v15  ;;  %v221_v20 = vld [vmem:[#allocation5 + $0xc] sm:$0xf]  ;;  %148 = vmatpush.bf16.msra.mxu3 %v215_v12  ;;  %v195_v21 = vor.u32 %v223_v19, %v194_v18  ;;  %v196_v22 = vld [vmem:[#allocation5 + $0x18] sm:$0xf0]  ;;  %v45_v23 = vld [vmem:[#allocation2] sm:$0xff]  ;;  %vm96_vm0 = vcmask 261120  }
  0x12   :  { %v46_v24 = vld [vmem:[#allocation2 + $0x8] sm:$0xff]  ;;  %v199_v25 = vor.u32 %v221_v20, %v196_v22  ;;  %s321_s0 = smov [#allocation7]   ;;  %s170_s25 = sshll.u32 %s350_s2, 4  ;;  %s171_s25 = int_to_ptr.hbm [resolvable:$true] %s170_s25 }
  0x13   :  { %v47_v26 = vpack.c.bf16 %v46_v24, %v45_v23  ;;  %107 = vmatpush.bf16.msra.mxu0 %v187_v16  ;;  %s168_s1 = sshll.u32 %s321_s0, 4  ;;  %s322_s26 = smov 512   ;;  %s169_s1 = int_to_ptr.vmem [resolvable:$true] %s168_s1 }
  0x14   :  { %121 = vmatpush.bf16.msra.mxu1 %v191_v17  ;;  %s323_s27 = smov 32  }
  0x15   :  { %135 = vmatpush.bf16.msra.mxu2 %v195_v21  ;;  %149 = vmatpush.bf16.msra.mxu3 %v199_v25 }
  0x16   :  { %216 = vmatmul.msk.bf16.vlgmr.msra.gmra.mxu0 %vm96_vm0, %v47_v26 }
  0x17   :  { %217 = vmatmul.msk.bf16.vlgmr.msra.gmra.mxu1 %vm96_vm0, %v47_v26 }
  0x18   :  { %218 = vmatmul.msk.bf16.vlgmr.msra.gmra.mxu2 %vm96_vm0, %v47_v26  ;;  %219 = vmatmul.msk.bf16.vlgmr.msra.gmra.mxu3 %vm96_vm0, %v47_v26 }
  0x93   :  { %v109_v27 = vpop.f32.mrf.mxu0 }
  0x94   :  { %156 = vst [vmem:[#allocation7] sm:$0xff] %v109_v27  ;;  %v123_v28 = vpop.f32.mrf.mxu1 }
  0x95   :  { %157 = vst [vmem:[#allocation7 + $0x8] sm:$0xff] %v123_v28 }
  0x9b   :  { %v137_v29 = vpop.f32.mrf.mxu2  ;;  %v151_v30 = vpop.f32.mrf.mxu3 }
  0x9c   :  { %158 = vst [vmem:[#allocation7 + $0x10] sm:$0xff] %v137_v29  ;;  %v111_v31 = vpop.f32.mrf.mxu0  ;;  %v125_v32 = vpop.f32.mrf.mxu1 }
  0x9d   :  { %159 = vst [vmem:[#allocation7 + $0x18] sm:$0xff] %v151_v30 }
  0x9e   :  { %160 = vst [vmem:[#allocation7 + $0x20] sm:$0xff] %v111_v31 }
  0x9f   :  { %161 = vst [vmem:[#allocation7 + $0x28] sm:$0xff] %v125_v32 }
  0xa3   :  { %v139_v33 = vpop.f32.mrf.mxu2  ;;  %v153_v34 = vpop.f32.mrf.mxu3 }
  0xa4   :  { %162 = vst [vmem:[#allocation7 + $0x30] sm:$0xff] %v139_v33 }
  0xa5   :  { %163 = vst [vmem:[#allocation7 + $0x38] sm:$0xff] %v153_v34 }
  0xa6   :  { %176 = dma.vmem_to_hbm [thread:$0]  %s169_s1, 1024, %s171_s25, [#allocation4], %s322_s26, %s322_s26, %s323_s27  }
  0xa7   :  { %313 = dma.done.wait [#allocation4], 1024  }
  0xa8   :  { %314 = vsyncadd [#allocation4], 4294966272 }
  0xa9   :  { %181 = vsyncpa [#allocation3], 1 }
  0xaa   :  { %182 = vsyncpa [#allocation6], 1 }
  0xab   :  { %183 = vsyncpa [#allocation4], 1 }

</bundles_post_ra>
